<compile_context>
chip_gen: v7x
topology: tpu7x:2x2x1
jax: 0.10.0
libtpu: 0.0.40
codegen_flags: <defaults>
</compile_context>

<pallas_src>
import functools

import jax
import jax.numpy as jnp
from jax.experimental import pallas as pl
from jax.experimental.pallas import tpu as pltpu


# ----------------------------------------------------------------------------
# Kernel
# ----------------------------------------------------------------------------
def _conv3x3_bn_relu(x2d, w_ref, b_ref):
    """One base layer on a row-flattened tile.

    x2d:   (H, W*Cin) float32 activations, lane index = w*Cin + cin
    w_ref: (3, W*Cin, W*Cout) banded weights (horizontal taps, left/right
           replicate padding and BN scale pre-folded; one band per kernel
           row dy)
    b_ref: (1, W*Cout) folded BN bias, tiled per output pixel
    returns (H, W*Cout) float32
    """
    # Vertical replicate padding: row-shifted copies of x2d for dy = 0 / dy = 2
    # (row h reads source row max(h-1, 0) / min(h+1, H-1)).
    x_dn = jnp.concatenate([x2d[:1, :], x2d[:-1, :]], axis=0)
    x_up = jnp.concatenate([x2d[1:, :], x2d[-1:, :]], axis=0)

    # One MXU matmul per kernel row; horizontal taps are inside the banded
    # weight matrix, so the contraction is K = W*Cin per call.
    acc = jnp.dot(x_dn, w_ref[0], preferred_element_type=jnp.float32)
    acc += jnp.dot(x2d, w_ref[1], preferred_element_type=jnp.float32)
    acc += jnp.dot(x_up, w_ref[2], preferred_element_type=jnp.float32)

    # Folded BatchNorm bias + ReLU (Dropout = identity in eval mode).
    return jnp.maximum(acc + b_ref[...], 0.0)


def fused_block_kernel(x_ref, w1_ref, b1_ref, w2_ref, b2_ref, o_ref):
    x2d = x_ref[0]                                    # (H, W*C), stays resident
    y1 = _conv3x3_bn_relu(x2d, w1_ref, b1_ref)        # layer 1 (never hits HBM)
    y2 = _conv3x3_bn_relu(y1, w2_ref, b2_ref)         # layer 2
    o_ref[0] = (y2 + x2d).astype(o_ref.dtype)         # residual from resident x


# ----------------------------------------------------------------------------
# Wrapper
# ----------------------------------------------------------------------------
def _fold_layer(w_hwio, gamma, beta, rmean, rvar, width, eps=1e-5):
    """Fold eval-mode BN + horizontal replicate padding into banded weights.

    Returns
      w_mat: (3, W*Cin, W*Cout)   w_mat[dy, u*Cin+ci, w*Cout+co] =
                 sum_{dx : clip(w+dx-1, 0, W-1) == u} weight[dy,dx,ci,co]*scale[co]
      b_row: (1, W*Cout)          folded bias tiled per output pixel
    """
    scale = (gamma / jnp.sqrt(rvar + eps)).astype(jnp.float32)
    bias = (beta - rmean * scale).astype(jnp.float32)

    kh, kw, cin, cout = w_hwio.shape
    w_scaled = w_hwio.astype(jnp.float32) * scale[None, None, None, :]

    # Source pixel for output pixel w, horizontal tap dx, under replicate pad.
    idx = jnp.clip(
        jnp.arange(width)[:, None] + jnp.arange(kw)[None, :] - 1, 0, width - 1)
    sel = (idx[:, :, None] == jnp.arange(width)[None, None, :]).astype(
        jnp.float32)                                        # (W, kw, W)

    # banded[dy, u, ci, w, co] = sum_dx sel[w, dx, u] * w_scaled[dy, dx, ci, co]
    banded = jnp.einsum("wdu,ydio->yuiwo", sel, w_scaled)
    w_mat = banded.reshape(kh, width * cin, width * cout)
    b_row = jnp.tile(bias, width).reshape(1, width * cout)
    return w_mat, b_row


def _fused_block_nhwc(x_nhwc, params):
    """Fused BasicBlock on NHWC input. Returns NHWC output."""
    N, H, W, C = x_nhwc.shape
    assert params["w1"].shape[2] == params["w2"].shape[3] == C, (
        "residual add requires in_channel == out_channel")

    w1, b1 = _fold_layer(params["w1"], params["gamma1"], params["beta1"],
                         params["rmean1"], params["rvar1"], W)
    w2, b2 = _fold_layer(params["w2"], params["gamma2"], params["beta2"],
                         params["rmean2"], params["rvar2"], W)

    WC = W * C
    x_flat = x_nhwc.reshape(N, H, WC)         # contiguous reshape (free in XLA)

    out_flat = pl.pallas_call(
        fused_block_kernel,
        out_shape=jax.ShapeDtypeStruct((N, H, WC), x_flat.dtype),
        grid_spec=pltpu.PrefetchScalarGridSpec(
            num_scalar_prefetch=0,
            grid=(N,),
            in_specs=[
                pl.BlockSpec((1, H, WC), lambda n: (n, 0, 0)),
                # loop-invariant operands: constant index_map -> no re-DMA
                pl.BlockSpec((3, WC, WC), lambda n: (0, 0, 0)),
                pl.BlockSpec((1, WC), lambda n: (0, 0)),
                pl.BlockSpec((3, WC, WC), lambda n: (0, 0, 0)),
                pl.BlockSpec((1, WC), lambda n: (0, 0)),
            ],
            out_specs=pl.BlockSpec((1, H, WC), lambda n: (n, 0, 0)),
        ),
        compiler_params=pltpu.CompilerParams(
            dimension_semantics=("parallel",)),
    )(x_flat, w1, b1, w2, b2)

    return out_flat.reshape(N, H, W, C)


@jax.jit
def basic_block_forward(x_nchw, params):
    """BasicBlock forward, PyTorch NCHW in / NCHW out.

    The Pallas path itself is NHWC (lane-flattened); the boundary transposes
    below disappear if the surrounding model is kept NHWC end-to-end.
    """
    x = jnp.transpose(x_nchw, (0, 2, 3, 1))       # NCHW -> NHWC
    y = _fused_block_nhwc(x, params)
    return jnp.transpose(y, (0, 3, 1, 2))         # NHWC -> NCHW


# ----------------------------------------------------------------------------
# Pure-JAX reference (for correctness check)
# ----------------------------------------------------------------------------
def _ref_layer(x, w, gamma, beta, rmean, rvar, eps=1e-5):
    scale = gamma / jnp.sqrt(rvar + eps)
    bias = beta - rmean * scale
    xp = jnp.pad(x, ((0, 0), (1, 1), (1, 1), (0, 0)), mode="edge")
    y = jax.lax.conv_general_dilated(
        xp, w, window_strides=(1, 1), padding="VALID",
        dimension_numbers=("NHWC", "HWIO", "NHWC"))
    return jnp.maximum(y * scale + bias, 0.0)


def basic_block_reference(x_nchw, params):
    x = jnp.transpose(x_nchw, (0, 2, 3, 1))
    y1 = _ref_layer(x, params["w1"], params["gamma1"], params["beta1"],
                    params["rmean1"], params["rvar1"])
    y2 = _ref_layer(y1, params["w2"], params["gamma2"], params["beta2"],
                    params["rmean2"], params["rvar2"]) + x
    return jnp.transpose(y2, (0, 3, 1, 2))


# ----------------------------------------------------------------------------
# Main
# ----------------------------------------------------------------------------
if __name__ == "__main__":
    N, C, H, W = 2, 4, 16, 16  # residual requires in_channel == out_channel
    key = jax.random.PRNGKey(0)
    k_x, k_w1, k_w2, k_g1, k_b1, k_g2, k_b2, k_m1, k_m2 = jax.random.split(key, 9)

    x = jax.random.normal(k_x, (N, C, H, W), jnp.float32)

    params = {
        # conv weights in HWIO layout: (3, 3, Cin, Cout)
        "w1": jax.random.normal(k_w1, (3, 3, C, C), jnp.float32) * 0.2,
        "w2": jax.random.normal(k_w2, (3, 3, C, C), jnp.float32) * 0.2,
        # BatchNorm parameters / running stats (eval mode)
        "gamma1": 1.0 + 0.1 * jax.random.normal(k_g1, (C,), jnp.float32),
        "beta1": 0.1 * jax.random.normal(k_b1, (C,), jnp.float32),
        "rmean1": 0.05 * jax.random.normal(k_m1, (C,), jnp.float32),
        "rvar1": jnp.ones((C,), jnp.float32) * 1.2,
        "gamma2": 1.0 + 0.1 * jax.random.normal(k_g2, (C,), jnp.float32),
        "beta2": 0.1 * jax.random.normal(k_b2, (C,), jnp.float32),
        "rmean2": 0.05 * jax.random.normal(k_m2, (C,), jnp.float32),
        "rvar2": jnp.ones((C,), jnp.float32) * 0.9,
    }

    out = basic_block_forward(x, params)
    out = jax.block_until_ready(out)

    ref = basic_block_reference(x, params)
    ref = jax.block_until_ready(ref)

    assert out.shape == (N, C, H, W), out.shape
    assert jnp.allclose(out, ref, atol=1e-4, rtol=1e-4), \
        float(jnp.max(jnp.abs(out - ref)))

    print("KERNEL_OK")
</pallas_src>

<mosaic_0001>
module attributes {stable_mosaic.version = 11 : i64} {
  func.func @fused_block_kernel(%arg0: i32, %arg1: memref<1x16x64xf32, #tpu.memory_space<vmem>>, %arg2: memref<3x64x64xf32, #tpu.memory_space<vmem>>, %arg3: memref<1x64xf32, #tpu.memory_space<vmem>>, %arg4: memref<3x64x64xf32, #tpu.memory_space<vmem>>, %arg5: memref<1x64xf32, #tpu.memory_space<vmem>>, %arg6: memref<1x16x64xf32, #tpu.memory_space<vmem>>) attributes {dimension_semantics = [#tpu.dimension_semantics<parallel>], iteration_bounds = array<i64: 2>, scalar_prefetch = 0 : i64, scratch_operands = 0 : i64, tpu.core_type = #tpu.core_type<tc>, window_params = [{transform_indices = @transform_0, window_bounds = array<i64: 1, 16, 64>}, {pipeline_mode = #tpu.pipeline_mode<synchronous>, transform_indices = @transform_1, window_bounds = array<i64: 3, 64, 64>}, {pipeline_mode = #tpu.pipeline_mode<synchronous>, transform_indices = @transform_2, window_bounds = array<i64: 1, 64>}, {pipeline_mode = #tpu.pipeline_mode<synchronous>, transform_indices = @transform_3, window_bounds = array<i64: 3, 64, 64>}, {pipeline_mode = #tpu.pipeline_mode<synchronous>, transform_indices = @transform_4, window_bounds = array<i64: 1, 64>}, {transform_indices = @transform_5, window_bounds = array<i64: 1, 16, 64>}]} {
    %c0 = arith.constant 0 : index
    %c0_0 = arith.constant 0 : index
    %c0_1 = arith.constant 0 : index
    %0 = vector.load %arg1[%c0, %c0_0, %c0_1] : memref<1x16x64xf32, #tpu.memory_space<vmem>>, vector<1x16x64xf32>
    %1 = vector.shape_cast %0 : vector<1x16x64xf32> to vector<16x64xf32>
    %2 = vector.extract_strided_slice %1 {offsets = [0, 0], sizes = [1, 64], strides = [1, 1]} : vector<16x64xf32> to vector<1x64xf32>
    %3 = vector.extract_strided_slice %1 {offsets = [0, 0], sizes = [15, 64], strides = [1, 1]} : vector<16x64xf32> to vector<15x64xf32>
    %4 = tpu.concatenate %2, %3 in 0 : vector<1x64xf32>, vector<15x64xf32> -> vector<16x64xf32>
    %5 = vector.extract_strided_slice %1 {offsets = [1, 0], sizes = [15, 64], strides = [1, 1]} : vector<16x64xf32> to vector<15x64xf32>
    %6 = vector.extract_strided_slice %1 {offsets = [15, 0], sizes = [1, 64], strides = [1, 1]} : vector<16x64xf32> to vector<1x64xf32>
    %7 = tpu.concatenate %5, %6 in 0 : vector<15x64xf32>, vector<1x64xf32> -> vector<16x64xf32>
    %c0_2 = arith.constant 0 : index
    %c0_3 = arith.constant 0 : index
    %c0_4 = arith.constant 0 : index
    %8 = vector.load %arg2[%c0_2, %c0_3, %c0_4] : memref<3x64x64xf32, #tpu.memory_space<vmem>>, vector<1x64x64xf32>
    %9 = vector.shape_cast %8 : vector<1x64x64xf32> to vector<64x64xf32>
    %cst = arith.constant dense<0.000000e+00> : vector<16x64xf32>
    %10 = tpu.matmul %4, %9, %cst {dimension_numbers = #tpu.dot_dimension_numbers<[1], [0], [0], [1], [0, 0, 1, 1], [], []>} : vector<16x64xf32>, vector<64x64xf32>, vector<16x64xf32> -> vector<16x64xf32>
    %c1 = arith.constant 1 : index
    %c0_5 = arith.constant 0 : index
    %c0_6 = arith.constant 0 : index
    %11 = vector.load %arg2[%c1, %c0_5, %c0_6] : memref<3x64x64xf32, #tpu.memory_space<vmem>>, vector<1x64x64xf32>
    %12 = vector.shape_cast %11 : vector<1x64x64xf32> to vector<64x64xf32>
    %cst_7 = arith.constant dense<0.000000e+00> : vector<16x64xf32>
    %13 = tpu.matmul %1, %12, %cst_7 {dimension_numbers = #tpu.dot_dimension_numbers<[1], [0], [0], [1], [0, 0, 1, 1], [], []>} : vector<16x64xf32>, vector<64x64xf32>, vector<16x64xf32> -> vector<16x64xf32>
    %14 = arith.addf %10, %13 : vector<16x64xf32>
    %c2 = arith.constant 2 : index
    %c0_8 = arith.constant 0 : index
    %c0_9 = arith.constant 0 : index
    %15 = vector.load %arg2[%c2, %c0_8, %c0_9] : memref<3x64x64xf32, #tpu.memory_space<vmem>>, vector<1x64x64xf32>
    %16 = vector.shape_cast %15 : vector<1x64x64xf32> to vector<64x64xf32>
    %cst_10 = arith.constant dense<0.000000e+00> : vector<16x64xf32>
    %17 = tpu.matmul %7, %16, %cst_10 {dimension_numbers = #tpu.dot_dimension_numbers<[1], [0], [0], [1], [0, 0, 1, 1], [], []>} : vector<16x64xf32>, vector<64x64xf32>, vector<16x64xf32> -> vector<16x64xf32>
    %18 = arith.addf %14, %17 : vector<16x64xf32>
    %c0_11 = arith.constant 0 : index
    %c0_12 = arith.constant 0 : index
    %19 = vector.load %arg3[%c0_11, %c0_12] : memref<1x64xf32, #tpu.memory_space<vmem>>, vector<1x64xf32>
    %20 = vector.broadcast %19 : vector<1x64xf32> to vector<16x64xf32>
    %21 = arith.addf %18, %20 : vector<16x64xf32>
    %cst_13 = arith.constant 0.000000e+00 : f32
    %22 = vector.broadcast %cst_13 : f32 to vector<16x64xf32>
    %23 = arith.maximumf %21, %22 : vector<16x64xf32>
    %24 = vector.extract_strided_slice %23 {offsets = [0, 0], sizes = [1, 64], strides = [1, 1]} : vector<16x64xf32> to vector<1x64xf32>
    %25 = vector.extract_strided_slice %23 {offsets = [0, 0], sizes = [15, 64], strides = [1, 1]} : vector<16x64xf32> to vector<15x64xf32>
    %26 = tpu.concatenate %24, %25 in 0 : vector<1x64xf32>, vector<15x64xf32> -> vector<16x64xf32>
    %27 = vector.extract_strided_slice %23 {offsets = [1, 0], sizes = [15, 64], strides = [1, 1]} : vector<16x64xf32> to vector<15x64xf32>
    %28 = vector.extract_strided_slice %23 {offsets = [15, 0], sizes = [1, 64], strides = [1, 1]} : vector<16x64xf32> to vector<1x64xf32>
    %29 = tpu.concatenate %27, %28 in 0 : vector<15x64xf32>, vector<1x64xf32> -> vector<16x64xf32>
    %c0_14 = arith.constant 0 : index
    %c0_15 = arith.constant 0 : index
    %c0_16 = arith.constant 0 : index
    %30 = vector.load %arg4[%c0_14, %c0_15, %c0_16] : memref<3x64x64xf32, #tpu.memory_space<vmem>>, vector<1x64x64xf32>
    %31 = vector.shape_cast %30 : vector<1x64x64xf32> to vector<64x64xf32>
    %cst_17 = arith.constant dense<0.000000e+00> : vector<16x64xf32>
    %32 = tpu.matmul %26, %31, %cst_17 {dimension_numbers = #tpu.dot_dimension_numbers<[1], [0], [0], [1], [0, 0, 1, 1], [], []>} : vector<16x64xf32>, vector<64x64xf32>, vector<16x64xf32> -> vector<16x64xf32>
    %c1_18 = arith.constant 1 : index
    %c0_19 = arith.constant 0 : index
    %c0_20 = arith.constant 0 : index
    %33 = vector.load %arg4[%c1_18, %c0_19, %c0_20] : memref<3x64x64xf32, #tpu.memory_space<vmem>>, vector<1x64x64xf32>
    %34 = vector.shape_cast %33 : vector<1x64x64xf32> to vector<64x64xf32>
    %cst_21 = arith.constant dense<0.000000e+00> : vector<16x64xf32>
    %35 = tpu.matmul %23, %34, %cst_21 {dimension_numbers = #tpu.dot_dimension_numbers<[1], [0], [0], [1], [0, 0, 1, 1], [], []>} : vector<16x64xf32>, vector<64x64xf32>, vector<16x64xf32> -> vector<16x64xf32>
    %36 = arith.addf %32, %35 : vector<16x64xf32>
    %c2_22 = arith.constant 2 : index
    %c0_23 = arith.constant 0 : index
    %c0_24 = arith.constant 0 : index
    %37 = vector.load %arg4[%c2_22, %c0_23, %c0_24] : memref<3x64x64xf32, #tpu.memory_space<vmem>>, vector<1x64x64xf32>
    %38 = vector.shape_cast %37 : vector<1x64x64xf32> to vector<64x64xf32>
    %cst_25 = arith.constant dense<0.000000e+00> : vector<16x64xf32>
    %39 = tpu.matmul %29, %38, %cst_25 {dimension_numbers = #tpu.dot_dimension_numbers<[1], [0], [0], [1], [0, 0, 1, 1], [], []>} : vector<16x64xf32>, vector<64x64xf32>, vector<16x64xf32> -> vector<16x64xf32>
    %40 = arith.addf %36, %39 : vector<16x64xf32>
    %c0_26 = arith.constant 0 : index
    %c0_27 = arith.constant 0 : index
    %41 = vector.load %arg5[%c0_26, %c0_27] : memref<1x64xf32, #tpu.memory_space<vmem>>, vector<1x64xf32>
    %42 = vector.broadcast %41 : vector<1x64xf32> to vector<16x64xf32>
    %43 = arith.addf %40, %42 : vector<16x64xf32>
    %cst_28 = arith.constant 0.000000e+00 : f32
    %44 = vector.broadcast %cst_28 : f32 to vector<16x64xf32>
    %45 = arith.maximumf %43, %44 : vector<16x64xf32>
    %46 = arith.addf %45, %1 : vector<16x64xf32>
    %c0_29 = arith.constant 0 : index
    %c0_30 = arith.constant 0 : index
    %c0_31 = arith.constant 0 : index
    %47 = vector.load %arg6[%c0_29, %c0_30, %c0_31] : memref<1x16x64xf32, #tpu.memory_space<vmem>>, vector<1x16x64xf32>
    %48 = vector.shape_cast %47 : vector<1x16x64xf32> to vector<16x64xf32>
    %49 = vector.shape_cast %46 : vector<16x64xf32> to vector<1x16x64xf32>
    tpu.vector_store %arg6[%c0_29, %c0_30, %c0_31], %49 {strides = array<i32>} : memref<1x16x64xf32, #tpu.memory_space<vmem>>, vector<1x16x64xf32>,
    return
  }
  func.func @transform_0(%arg0: i32) -> (i32, i32, i32) {
    %c0_i32 = arith.constant 0 : i32
    %c0_i32_0 = arith.constant 0 : i32
    %c0_i32_1 = arith.constant 0 : i32
    return %arg0, %c0_i32, %c0_i32_0 : i32, i32, i32
  }
  func.func @transform_1(%arg0: i32) -> (i32, i32, i32) {
    %c0_i32 = arith.constant 0 : i32
    %c0_i32_0 = arith.constant 0 : i32
    %c0_i32_1 = arith.constant 0 : i32
    %c0_i32_2 = arith.constant 0 : i32
    return %c0_i32, %c0_i32_0, %c0_i32_1 : i32, i32, i32
  }
  func.func @transform_2(%arg0: i32) -> (i32, i32) {
    %c0_i32 = arith.constant 0 : i32
    %c0_i32_0 = arith.constant 0 : i32
    %c0_i32_1 = arith.constant 0 : i32
    return %c0_i32, %c0_i32_0 : i32, i32
  }
  func.func @transform_3(%arg0: i32) -> (i32, i32, i32) {
    %c0_i32 = arith.constant 0 : i32
    %c0_i32_0 = arith.constant 0 : i32
    %c0_i32_1 = arith.constant 0 : i32
    %c0_i32_2 = arith.constant 0 : i32
    return %c0_i32, %c0_i32_0, %c0_i32_1 : i32, i32, i32
  }
  func.func @transform_4(%arg0: i32) -> (i32, i32) {
    %c0_i32 = arith.constant 0 : i32
    %c0_i32_0 = arith.constant 0 : i32
    %c0_i32_1 = arith.constant 0 : i32
    return %c0_i32, %c0_i32_0 : i32, i32
  }
  func.func @transform_5(%arg0: i32) -> (i32, i32, i32) {
    %c0_i32 = arith.constant 0 : i32
    %c0_i32_0 = arith.constant 0 : i32
    %c0_i32_1 = arith.constant 0 : i32
    return %arg0, %c0_i32, %c0_i32_0 : i32, i32, i32
  }
}

</mosaic_0001>

<bundles_post_ra>
// kernel: tile.13
= control target key start
LH: loop header
LB: loop body
LE: loop exit
PB: predicated region body
PF: predicated region fallthrough
CT: control target
= control target key end

     0   :  { %s28_s0 = inlined_call_operand.vmem [shape: f32[4], index: 0, kind: input, shape index: {}]   ;;  %s29_s1 = inlined_call_operand.vmem [shape: f32[16,4], index: 1, kind: output, shape index: {}]  }
   0x1   :  { %v4_v0 = vld [vmem:[%s28_s0] ss:$0 sm:$0xff] }
   0x2   :  { %5 = vst [vmem:[%s29_s1] sm:$0xff] %v4_v0  ;;  %8 = vst [vmem:[%s29_s1 + $0x8] sm:$0xff] %v4_v0 }

// kernel: tile.14
= control target key start
LH: loop header
LB: loop body
LE: loop exit
PB: predicated region body
PF: predicated region fallthrough
CT: control target
= control target key end

     0   :  { %s131_s10 = smov 60   ;;  %s132_s11 = smov 52   ;;  %vm3_vm0 = vcmask 31744   ;;  %vm9_vm1 = vcmask 523744   ;;  %vm15_vm2 = vcmask 490944   ;;  %vm21_vm3 = vcmask 458144   ;;  %s207_s0 = inlined_call_operand.vmem [shape: f32[16,4], index: 0, kind: input, shape index: {}]   ;;  %s208_s1 = inlined_call_operand.vmem [shape: f32[1,64], index: 1, kind: output, shape index: {}]  }
   0x1   :  { %v101_v0 = vld [vmem:[%s207_s0 + $0xf] sm:$0x1]   ;;  %v103_v1 = vld [vmem:[%s207_s0 + $0xd] sm:$0x1]   ;;  %v102_v2 = vld [vmem:[%s207_s0 + $0xe] sm:$0x1]  }
   0x2   :  { %7 = vrot.lane.b32.xlu0 %v101_v0, %s131_s10  ;;  %19 = vrot.lane.b32.xlu1 %v103_v1, %s132_s11  ;;  %v104_v3 = vld [vmem:[%s207_s0 + $0xc] sm:$0x1]   ;;  %s133_s16 = smov 56   ;;  %s134_s17 = smov 48   ;;  %v105_v4 = vld [vmem:[%s207_s0 + $0xb] sm:$0x1]  }
   0x3   :  { %v106_v5 = vld [vmem:[%s207_s0 + $0xa] sm:$0x1]   ;;  %v2_v6 = vld [vmem:[%s207_s0] sm:$0x1]   ;;  %s135_s24 = smov 44   ;;  %s136_s25 = smov 40  }
   0x4   :  { %4 = vst.msk [vmem:[#allocation0] sm:$0x1] %vm3_vm0, %v2_v6   ;;  %v107_v7 = vld [vmem:[%s207_s0 + $0x9] sm:$0x1]   ;;  %v108_v8 = vld [vmem:[%s207_s0 + $0x8] sm:$0x1]  }
   0x5   :  { %s137_s30 = smov 36   ;;  %s138_s2 = smov 32   ;;  %v109_v9 = vld [vmem:[%s207_s0 + $0x7] sm:$0x1]   ;;  %v110_v10 = vld [vmem:[%s207_s0 + $0x6] sm:$0x1]  }
   0x6   :  { %13 = vrot.lane.b32.xlu0 %v102_v2, %s133_s16  ;;  %25 = vrot.lane.b32.xlu1 %v104_v3, %s134_s17  ;;  %s139_s7 = smov 28   ;;  %s140_s8 = smov 24   ;;  %v111_v11 = vld [vmem:[%s207_s0 + $0x5] sm:$0x1]   ;;  %v112_v12 = vld [vmem:[%s207_s0 + $0x4] sm:$0x1]  }
   0x7   :  { %s141_s13 = smov 20   ;;  %s142_s14 = smov 16   ;;  %v113_v13 = vld [vmem:[%s207_s0 + $0x3] sm:$0x1]   ;;  %v114_v14 = vld [vmem:[%s207_s0 + $0x2] sm:$0x1]  }
   0x8   :  { %s143_s19 = smov 12   ;;  %s144_s20 = smov 8   ;;  %v115_v15 = vld [vmem:[%s207_s0 + $0x1] sm:$0x1]   ;;  %vm27_vm4 = vcmask 425344   ;;  %vm33_vm5 = vcmask 392544  }
   0x9   :  { %s145_s0 = smov 4   ;;  %vm39_vm6 = vcmask 359744   ;;  %vm45_vm7 = vcmask 326944   ;;  %vm51_vm8 = vcmask 294144   ;;  %vm57_vm9 = vcmask 261344  }
   0xa   :  { %31 = vrot.lane.b32.xlu0 %v105_v4, %s135_s24  ;;  %37 = vrot.lane.b32.xlu1 %v106_v5, %s136_s25  ;;  %vm63_vm10 = vcmask 228544   ;;  %vm69_vm11 = vcmask 195744   ;;  %vm75_vm12 = vcmask 162944   ;;  %vm81_vm13 = vcmask 130144  }
   0xb   :  { %vm87_vm14 = vcmask 97344   ;;  %vm93_vm15 = vcmask 64544  }
   0xe   :  { %43 = vrot.lane.b32.xlu0 %v107_v7, %s137_s30  ;;  %49 = vrot.lane.b32.xlu1 %v108_v8, %s138_s2 }
  0x12   :  { %55 = vrot.lane.b32.xlu0 %v109_v9, %s139_s7  ;;  %61 = vrot.lane.b32.xlu1 %v110_v10, %s140_s8 }
  0x16   :  { %67 = vrot.lane.b32.xlu0 %v111_v11, %s141_s13  ;;  %73 = vrot.lane.b32.xlu1 %v112_v12, %s142_s14 }
  0x1a   :  { %79 = vrot.lane.b32.xlu0 %v113_v13, %s143_s19  ;;  %85 = vrot.lane.b32.xlu1 %v114_v14, %s144_s20 }
  0x1e   :  { %91 = vrot.lane.b32.xlu0 %v115_v15, %s145_s0 }
  0x74   :  { %v8_v16 = vpop.permute.xlu0 %7   ;;  %v20_v17 = vpop.permute.xlu1 %19  }
  0x75   :  { %10 = vst.msk [vmem:[#allocation0] sm:$0x1] %vm9_vm1, %v8_v16  }
  0x78   :  { %v14_v18 = vpop.permute.xlu0 %13   ;;  %v26_v19 = vpop.permute.xlu1 %25  }
  0x79   :  { %16 = vst.msk [vmem:[#allocation0] sm:$0x1] %vm15_vm2, %v14_v18  }
  0x7a   :  { %22 = vst.msk [vmem:[#allocation0] sm:$0x1] %vm21_vm3, %v20_v17  }
  0x7b   :  { %28 = vst.msk [vmem:[#allocation0] sm:$0x1] %vm27_vm4, %v26_v19  }
  0x7c   :  { %v32_v20 = vpop.permute.xlu0 %31   ;;  %v38_v21 = vpop.permute.xlu1 %37  }
  0x7d   :  { %34 = vst.msk [vmem:[#allocation0] sm:$0x1] %vm33_vm5, %v32_v20  }
  0x7e   :  { %40 = vst.msk [vmem:[#allocation0] sm:$0x1] %vm39_vm6, %v38_v21  }
  0x80   :  { %v44_v22 = vpop.permute.xlu0 %43   ;;  %v50_v23 = vpop.permute.xlu1 %49  }
  0x81   :  { %46 = vst.msk [vmem:[#allocation0] sm:$0x1] %vm45_vm7, %v44_v22  }
  0x82   :  { %52 = vst.msk [vmem:[#allocation0] sm:$0x1] %vm51_vm8, %v50_v23  }
  0x84   :  { %v56_v24 = vpop.permute.xlu0 %55   ;;  %v62_v25 = vpop.permute.xlu1 %61  }
  0x85   :  { %58 = vst.msk [vmem:[#allocation0] sm:$0x1] %vm57_vm9, %v56_v24  }
  0x86   :  { %64 = vst.msk [vmem:[#allocation0] sm:$0x1] %vm63_vm10, %v62_v25  }
  0x88   :  { %v68_v26 = vpop.permute.xlu0 %67   ;;  %v74_v27 = vpop.permute.xlu1 %73  }
  0x89   :  { %70 = vst.msk [vmem:[#allocation0] sm:$0x1] %vm69_vm11, %v68_v26  }
  0x8a   :  { %76 = vst.msk [vmem:[#allocation0] sm:$0x1] %vm75_vm12, %v74_v27  }
  0x8c   :  { %v80_v28 = vpop.permute.xlu0 %79   ;;  %v86_v29 = vpop.permute.xlu1 %85  }
  0x8d   :  { %82 = vst.msk [vmem:[#allocation0] sm:$0x1] %vm81_vm13, %v80_v28  }
  0x8e   :  { %88 = vst.msk [vmem:[#allocation0] sm:$0x1] %vm87_vm14, %v86_v29  }
  0x90   :  { %v92_v30 = vpop.permute.xlu0 %91  }
  0x91   :  { %94 = vst.msk [vmem:[#allocation0] sm:$0x1] %vm93_vm15, %v92_v30  }
  0x98   :  { %v98_v31 = vld [vmem:[#allocation0] sm:$0x1] }
  0x99   :  { %100 = vst [vmem:[%s208_s1] sm:$0x1] %v98_v31 }

// kernel: basic_block_forward.1
= control target key start
LH: loop header
LB: loop body
LE: loop exit
PB: predicated region body
PF: predicated region fallthrough
CT: control target
= control target key end

     0   :  { %s1252_s18 = smov 0   ;;  %s1462_s0 = inlined_call_operand.vmem [shape: f32[2,16,64], index: 0, kind: input, shape index: {}]   ;;  %s1463_s1 = inlined_call_operand.vmem [shape: f32[3,64,64], index: 1, kind: input, shape index: {}]   ;;  %s1464_s2 = inlined_call_operand.vmem [shape: f32[1,64], index: 2, kind: input, shape index: {}]   ;;  %s1465_s3 = inlined_call_operand.vmem [shape: f32[3,64,64], index: 3, kind: input, shape index: {}]   ;;  %s1466_s4 = inlined_call_operand.vmem [shape: f32[1,64], index: 4, kind: input, shape index: {}]   ;;  %s1467_s5 = inlined_call_operand.vmem [shape: f32[2,16,64], index: 5, kind: output, shape index: {}]  }
   0x1 LB: > { %s869_s19 = sadd.s32 4294967295, %s1220_s18   ;;  %p873_p0 = scmp.ge.s32.totalorder %s1220_s18, 1  ;;  %s1220_s18 = sphi %s1252_s18, %s15_s18  }
   0x2   : > { %p187_p1 = scmp.lt.s32.totalorder %s1220_s18, 3 }
   0x4   : > { %p188_p2 = pnand %p873_p0, %p187_p1 }
   0x5   : > { %v878_v0 = vld [vmem:[%s1463_s1 + $0x40] sm:$0xff] (!%p188_p2)  ;;  %v879_v1 = vld [vmem:[%s1463_s1 + $0x48] sm:$0xff] (!%p188_p2)  ;;  %v880_v2 = vld [vmem:[%s1463_s1 + $0x50] sm:$0xff] (!%p188_p2)  ;;  %p215_p3 = scmp.lt.s32.totalorder (!%p188_p2), %s869_s19, 1  ;;  %vm258_vm0 = vcmask (!%p188_p2), 523264   ;;  %vm229_vm1 = vcmask (!%p188_p2), 1040384  }
   0x6   : > { %191 = sbr.rel (%p188_p2) target bundleno = 526 (0x20e), region = 40  ;;  %v1102_v3 = vpack.c.bf16 (!%p188_p2), %v879_v1, %v878_v0  ;;  %v881_v4 = vld [vmem:[%s1463_s1 + $0x58] sm:$0xff] (!%p188_p2)  ;;  %v882_v6 = vld [vmem:[%s1463_s1 + $0x60] sm:$0xff] (!%p188_p2)  ;;  %v883_v7 = vld [vmem:[%s1463_s1 + $0x68] sm:$0xff] (!%p188_p2)  ;;  %vm235_vm2 = vcmask (!%p188_p2), 1046528  }
   0x7   : > { %v1106_v5 = vpack.c.bf16 (!%p188_p2), %v881_v4, %v880_v2  ;;  %v1110_v8 = vpack.c.bf16 (!%p188_p2), %v883_v7, %v882_v6  ;;  %v884_v9 = vld [vmem:[%s1463_s1 + $0x70] sm:$0xff] (!%p188_p2)  ;;  %v885_v10 = vld [vmem:[%s1463_s1 + $0x78] sm:$0xff] (!%p188_p2)  ;;  %v901_v12 = vld [vmem:[%s1465_s3 + $0x40] sm:$0xff] (!%p188_p2) }
   0x8   : > { %1103 = vmatprep.subr.bf16.mxu0 (!%p188_p2), %v1102_v3  ;;  %v1114_v13 = vpack.c.bf16 (!%p188_p2), %v885_v10, %v884_v9  ;;  %v902_v14 = vld [vmem:[%s1465_s3 + $0x48] sm:$0xff] (!%p188_p2)  ;;  %v903_v15 = vld [vmem:[%s1465_s3 + $0x50] sm:$0xff] (!%p188_p2)  ;;  %v904_v16 = vld [vmem:[%s1465_s3 + $0x58] sm:$0xff] (!%p188_p2) }
   0x9   : > { %1105 = vmatpush3.bf16.msra.mxu0 (!%p188_p2), %v1102_v3  ;;  %v241_v17 = vld [vmem:[%s1463_s1] sm:$0xff] (!%p188_p2)  ;;  %v242_v18 = vld [vmem:[%s1463_s1 + $0x8] sm:$0xff] (!%p188_p2)  ;;  %v1150_v19 = vpack.c.bf16 (!%p188_p2), %v902_v14, %v901_v12  ;;  %v1154_v20 = vpack.c.bf16 (!%p188_p2), %v904_v16, %v903_v15  ;;  %v243_v25 = vld [vmem:[%s1463_s1 + $0x10] sm:$0xff] (!%p188_p2) }
   0xa   : > { %1107 = vmatprep.subr.bf16.mxu0 (!%p188_p2), %v1106_v5  ;;  %v905_v21 = vld [vmem:[%s1465_s3 + $0x60] sm:$0xff] (!%p188_p2)  ;;  %v906_v22 = vld [vmem:[%s1465_s3 + $0x68] sm:$0xff] (!%p188_p2)  ;;  %v1118_v23 = vpack.c.bf16 (!%p188_p2), %v242_v18, %v241_v17  ;;  %v244_v26 = vld [vmem:[%s1463_s1 + $0x18] sm:$0xff] (!%p188_p2) }
   0xb   : > { %1151 = vmatprep.subr.bf16.mxu1 (!%p188_p2), %v1150_v19  ;;  %v1158_v27 = vpack.c.bf16 (!%p188_p2), %v906_v22, %v905_v21  ;;  %v1122_v29 = vpack.c.bf16 (!%p188_p2), %v244_v26, %v243_v25  ;;  %v245_v31 = vld [vmem:[%s1463_s1 + $0x20] sm:$0xff] (!%p188_p2)  ;;  %v246_v32 = vld [vmem:[%s1463_s1 + $0x28] sm:$0xff] (!%p188_p2)  ;;  %v247_v34 = vld [vmem:[%s1463_s1 + $0x30] sm:$0xff] (!%p188_p2) }
   0xc   : > { %1153 = vmatpush3.bf16.msra.mxu1 (!%p188_p2), %v1150_v19  ;;  %v1126_v33 = vpack.c.bf16 (!%p188_p2), %v246_v32, %v245_v31  ;;  %v248_v35 = vld [vmem:[%s1463_s1 + $0x38] sm:$0xff] (!%p188_p2)  ;;  %v890_v37 = vld [vmem:[%s1463_s1 + $0x80] sm:$0xff] (!%p188_p2)  ;;  %v891_v38 = vld [vmem:[%s1463_s1 + $0x88] sm:$0xff] (!%p188_p2) }
   0xd   : > { %s1469_s19 = smov (!%p215_p3, %s869_s19), 1  ;;  %1109 = vmatpush3.bf16.msra.mxu0 %v1106_v5  ;;  %1155 = vmatprep.subr.bf16.mxu1 %v1154_v20  ;;  %v1130_v36 = vpack.c.bf16 %v248_v35, %v247_v34  ;;  %v1134_v40 = vpack.c.bf16 %v891_v38, %v890_v37  ;;  %v892_v43 = vld [vmem:[%s1463_s1 + $0x90] sm:$0xff]  ;;  %v893_v44 = vld [vmem:[%s1463_s1 + $0x98] sm:$0xff]  ;;  %v894_v48 = vld [vmem:[%s1463_s1 + $0xa0] sm:$0xff] }
   0xe   : > { %s926_s7 = sshll.u32 %s1469_s19, 4  ;;  %1111 = vmatprep.subr.bf16.mxu0 %v1110_v8  ;;  %v1138_v46 = vpack.c.bf16 %v893_v44, %v892_v43  ;;  %v895_v49 = vld [vmem:[%s1463_s1 + $0xa8] sm:$0xff]  ;;  %v896_v51 = vld [vmem:[%s1463_s1 + $0xb0] sm:$0xff]  ;;  %v897_v52 = vld [vmem:[%s1463_s1 + $0xb8] sm:$0xff] }
   0xf   : > { %s219_s10 = scalar_lea.vmem %s1462_s0, %s926_s7  ;;  %v1142_v50 = vpack.c.bf16 %v895_v49, %v894_v48  ;;  %v1146_v53 = vpack.c.bf16 %v897_v52, %v896_v51  ;;  %v907_v55 = vld [vmem:[%s1465_s3 + $0x70] sm:$0xff]  ;;  %v908_v56 = vld [vmem:[%s1465_s3 + $0x78] sm:$0xff]  ;;  %v532_v58 = vld [vmem:[%s1465_s3] sm:$0xff]  ;;  %s224_s14 = scalar_lea.vmem %s1467_s5, %s926_s7 }
  0x10   : > { %v1292_v11 = vld [vmem:[%s219_s10] sm:$0xff]  ;;  %v1327_v28 = vld [vmem:[%s219_s10 + $0x8] sm:$0xff]  ;;  %1157 = vmatpush3.bf16.msra.mxu1 %v1154_v20  ;;  %v1162_v57 = vpack.c.bf16 %v908_v56, %v907_v55  ;;  %v534_v2 = vld [vmem:[%s1465_s3 + $0x10] sm:$0xff] }
  0x11   : > { %1004 = vmatprep.mubr.msk.f32.mxu0 %vm258_vm0, %v1292_v11  ;;  %1113 = vmatpush3.bf16.msra.mxu0 %v1110_v8  ;;  %v230_v24 = vrot.slane %v1292_v11, 7  ;;  %v231_v39 = vrot.slane %v1327_v28, 7  ;;  %v236_v41 = vrot.slane %v1292_v11, 1  ;;  %v237_v42 = vrot.slane %v1327_v28, 1  ;;  %v533_v59 = vld [vmem:[%s1465_s3 + $0x8] sm:$0xff]  ;;  %v535_v3 = vld [vmem:[%s1465_s3 + $0x18] sm:$0xff] }
  0x12   : > { %1115 = vmatprep.subr.bf16.mxu0 %v1114_v13  ;;  %1159 = vmatprep.subr.bf16.mxu1 %v1158_v27  ;;  %v1166_v60 = vpack.c.bf16 %v533_v59, %v532_v58  ;;  %v900_v61 = vld [vmem:[%s1464_s2] ss:$0 sm:$0xff]  ;;  %v1170_v7 = vpack.c.bf16 %v535_v3, %v534_v2  ;;  %v537_v12 = vld [vmem:[%s1465_s3 + $0x28] sm:$0xff]  ;;  %v538_v18 = vld [vmem:[%s1465_s3 + $0x30] sm:$0xff] }
  0x13   : > { %v234_v30 = vsel %vm229_vm1, %v1292_v11, %v230_v24  ;;  %v232_v45 = vsel %vm229_vm1, %v230_v24, %v231_v39  ;;  %v238_v47 = vsel %vm235_vm2, %v236_v41, %v237_v42  ;;  %v240_v54 = vsel %vm235_vm2, %v237_v42, %v1327_v28  ;;  %v536_v10 = vld [vmem:[%s1465_s3 + $0x20] sm:$0xff]  ;;  %v539_v19 = vld [vmem:[%s1465_s3 + $0x38] sm:$0xff]  ;;  %v914_v22 = vld [vmem:[%s1465_s3 + $0x88] sm:$0xff] }
  0x14   : > { %1161 = vmatpush3.bf16.msra.mxu1 %v1158_v27  ;;  %v1174_v17 = vpack.c.bf16 %v537_v12, %v536_v10  ;;  %v1178_v20 = vpack.c.bf16 %v539_v19, %v538_v18  ;;  %v913_v21 = vld [vmem:[%s1465_s3 + $0x80] sm:$0xff]  ;;  %v915_v24 = vld [vmem:[%s1465_s3 + $0x90] sm:$0xff]  ;;  %v916_v25 = vld [vmem:[%s1465_s3 + $0x98] sm:$0xff] }
  0x15   : > { %1117 = vmatpush3.bf16.msra.mxu0 %v1114_v13  ;;  %1163 = vmatprep.subr.bf16.mxu1 %v1162_v57  ;;  %v1186_v26 = vpack.c.bf16 %v916_v25, %v915_v24  ;;  %v917_v27 = vld [vmem:[%s1465_s3 + $0xa0] sm:$0xff]  ;;  %v919_v31 = vld [vmem:[%s1465_s3 + $0xb0] sm:$0xff]  ;;  %v920_v32 = vld [vmem:[%s1465_s3 + $0xb8] sm:$0xff] }
  0x16   : > { %1119 = vmatprep.subr.bf16.mxu0 %v1118_v23  ;;  %v923_v35 = vld [vmem:[%s1466_s4] ss:$0 sm:$0xff] }
  0x18   : > { %1005 = vmatmul.mubr.msk.f32.vlgmr.msra.gmra.mrb[0].mxu0 %vm258_vm0, %v1327_v28  ;;  %1165 = vmatpush3.bf16.msra.mxu1 %v1162_v57 }
  0x19   : > { %1121 = vmatpush3.bf16.msra.mxu0 %v1118_v23  ;;  %1023 = vmatprep.mubr.msk.f32.mxu0 %vm258_vm0, %v234_v30  ;;  %v1182_v23 = vpack.c.bf16 %v914_v22, %v913_v21 }
  0x1a   : > { %1123 = vmatprep.subr.bf16.mxu0 %v1122_v29  ;;  %1167 = vmatprep.subr.bf16.mxu1 %v1166_v60 }
  0x1d   : > { %1125 = vmatpush3.bf16.msra.mxu0 %v1122_v29  ;;  %v918_v29 = vld [vmem:[%s1465_s3 + $0xa8] sm:$0xff] }
  0x1e   : > { %1127 = vmatprep.subr.bf16.mxu0 %v1126_v33  ;;  %v1190_v30 = vpack.c.bf16 %v918_v29, %v917_v27 }
  0x21   : > { %1129 = vmatpush3.bf16.msra.mxu0 %v1126_v33  ;;  %v1194_v33 = vpack.c.bf16 %v920_v32, %v919_v31 }
  0x22   : > { %1131 = vmatprep.subr.bf16.mxu0 %v1130_v36 }
  0x25   : > { %1133 = vmatpush3.bf16.msra.mxu0 %v1130_v36 }
  0x26   : > { %1135 = vmatprep.subr.bf16.mxu0 %v1134_v40 }
  0x28   : > { %1024 = vmatmul.mubr.msk.f32.vlgmr.msra.gmra.mrb[0].mxu0 %vm258_vm0, %v232_v45 }
  0x29   : > { %1137 = vmatpush3.bf16.msra.mxu0 %v1134_v40  ;;  %1042 = vmatprep.mubr.msk.f32.mxu0 %vm258_vm0, %v238_v47 }
  0x2a   : > { %1139 = vmatprep.subr.bf16.mxu0 %v1138_v46 }
  0x2d   : > { %1141 = vmatpush3.bf16.msra.mxu0 %v1138_v46 }
  0x2e   : > { %1143 = vmatprep.subr.bf16.mxu0 %v1142_v50 }
  0x31   : > { %1145 = vmatpush3.bf16.msra.mxu0 %v1142_v50 }
  0x32   : > { %1147 = vmatprep.subr.bf16.mxu0 %v1146_v53 }
  0x35   : > { %1149 = vmatpush3.bf16.msra.mxu0 %v1146_v53 }
  0x38   : > { %1043 = vmatmul.mubr.msk.f32.vlgmr.msra.gmra.mrb[0].mxu0 %vm258_vm0, %v240_v54 }
 0x10b   : > { %v1044_v62 = vpop.f32.mrb[0].mxu0 }
 0x10c   : > { %v517_v63 = vadd.f32 %v1044_v62, %v900_v61  ;;  %v498_v0 = vpop.f32.mrb[1].mxu0 }
 0x10d   : > { %v516_v1 = vadd.f32 %v900_v61, %v498_v0 }
 0x10e   : > { %v519_v4 = vmax.f32 %v517_v63, 0.0 }
 0x10f   : > { %v518_v5 = vmax.f32 %v516_v1, 0.0 }
 0x110   : > { %v523_v6 = vrot.slane %v519_v4, 7  ;;  %v528_v8 = vrot.slane %v519_v4, 1 }
 0x111   : > { %1061 = vmatprep.mubr.msk.f32.mxu1 %vm258_vm0, %v518_v5  ;;  %v522_v9 = vrot.slane %v518_v5, 7  ;;  %v527_v13 = vrot.slane %v518_v5, 1 }
 0x112   : > { %1062 = vmatmul.mubr.msk.f32.vlgmr.msra.gmra.mrb[0].mxu1 %vm258_vm0, %v519_v4  ;;  %v531_v34 = vsel %vm235_vm2, %v528_v8, %v519_v4 }
 0x113   : > { %1169 = vmatpush3.bf16.msra.mxu1 %v1166_v60  ;;  %v526_v14 = vsel %vm229_vm1, %v518_v5, %v522_v9  ;;  %v524_v15 = vsel %vm229_vm1, %v522_v9, %v523_v6  ;;  %v529_v16 = vsel %vm235_vm2, %v527_v13, %v528_v8 }
 0x114   : > { %1080 = vmatprep.mubr.msk.f32.mxu1 %vm258_vm0, %v526_v14  ;;  %1171 = vmatprep.subr.bf16.mxu1 %v1170_v7 }
 0x117   : > { %1173 = vmatpush3.bf16.msra.mxu1 %v1170_v7 }
 0x118   : > { %1175 = vmatprep.subr.bf16.mxu1 %v1174_v17 }
 0x11b   : > { %1177 = vmatpush3.bf16.msra.mxu1 %v1174_v17 }
 0x11c   : > { %1179 = vmatprep.subr.bf16.mxu1 %v1178_v20 }
 0x11f   : > { %1181 = vmatpush3.bf16.msra.mxu1 %v1178_v20 }
 0x120   : > { %1183 = vmatprep.subr.bf16.mxu1 %v1182_v23 }
 0x122   : > { %1081 = vmatmul.mubr.msk.f32.vlgmr.msra.gmra.mrb[0].mxu1 %vm258_vm0, %v524_v15 }
 0x123   : > { %1185 = vmatpush3.bf16.msra.mxu1 %v1182_v23  ;;  %1099 = vmatprep.mubr.msk.f32.mxu1 %vm258_vm0, %v529_v16 }
 0x124   : > { %1187 = vmatprep.subr.bf16.mxu1 %v1186_v26 }
 0x127   : > { %1189 = vmatpush3.bf16.msra.mxu1 %v1186_v26 }
 0x128   : > { %1191 = vmatprep.subr.bf16.mxu1 %v1190_v30 }
 0x12b   : > { %1193 = vmatpush3.bf16.msra.mxu1 %v1190_v30 }
 0x12c   : > { %1195 = vmatprep.subr.bf16.mxu1 %v1194_v33 }
 0x12f   : > { %1197 = vmatpush3.bf16.msra.mxu1 %v1194_v33 }
 0x132   : > { %1100 = vmatmul.mubr.msk.f32.vlgmr.msra.gmra.mrb[0].mxu1 %vm258_vm0, %v531_v34 }
 0x205   : > { %v1101_v36 = vpop.f32.mrb[0].mxu1 }
 0x206   : > { %v807_v37 = vadd.f32 %v1101_v36, %v923_v35  ;;  %v788_v38 = vpop.f32.mrb[1].mxu1 }
 0x207   : > { %v806_v39 = vadd.f32 %v923_v35, %v788_v38 }
 0x208   : > { %v809_v40 = vmax.f32 %v807_v37, 0.0 }
 0x209   : > { %v808_v41 = vmax.f32 %v806_v39, 0.0 }
 0x20a   : > { %v811_v42 = vadd.f32 %v809_v40, %v1327_v28 }
 0x20b   : > { %v810_v43 = vadd.f32 %v808_v41, %v1292_v11 }
 0x20c   : > { %813 = vst.msk [vmem:[%s224_s14 + $0x8] sm:$0xff] %vm258_vm0, %v811_v42 }
 0x20d   : > { %812 = vst.msk [vmem:[%s224_s14] sm:$0xff] %vm258_vm0, %v810_v43 }
 0x20e PF: > { %s15_s18 = sadd.s32 1, %s1220_s18  }
 0x20f   : > { %p12_p4 = scmp.ge.s32.totalorder %s15_s18, 4  }
 0x211   :  { %14 = sbr.rel (!%p12_p4) target bundleno = 1 (0x1), region = 74 }

</bundles_post_ra>
